<compile_context>
chip_gen: v5e
topology: v5e:2x2
jax: 0.10.0
libtpu: 0.0.40
codegen_flags: <defaults>
</compile_context>

<pallas_src>
import jax
import jax.numpy as jnp
from jax.experimental import pallas as pl
from jax.experimental.pallas import tpu as pltpu

LANES = 128
SUBLANES = 8


def bpr_loss_kernel(pos_ref, neg_ref, out_ref):
    # In-kernel upcast: keeps HBM traffic at the inputs' native width.
    d = pos_ref[...].astype(jnp.float32) - neg_ref[...].astype(jnp.float32)
    # Numerically stable softplus(-d) = max(-d, 0) + log1p(exp(-|d|)).
    sp = jnp.maximum(-d, 0.0) + jnp.log1p(jnp.exp(-jnp.abs(d)))
    # Fold the row axis into the (8, 128) vreg shape: pure VPU vreg adds,
    # no per-step cross-lane (XLU) reduce and no scalar-path serialization.
    tile_rows = sp.shape[0]
    partial = sp.reshape(tile_rows // SUBLANES, SUBLANES, LANES).sum(axis=0)
    out_ref[0, :, :] = partial


def bpr_loss(pos_preds: jax.Array, neg_preds: jax.Array,
             *, block_rows: int = 2048) -> jax.Array:
    assert pos_preds.shape == neg_preds.shape
    assert jnp.issubdtype(pos_preds.dtype, jnp.floating)
    assert block_rows % SUBLANES == 0

    n = pos_preds.size

    # Lane-dense layout: flatten to (rows, 128); pad rows up so that the tile
    # shape obeys the (8, 128) constraint and divides the row count evenly.
    rows = -(-n // LANES)
    rows = -(-rows // SUBLANES) * SUBLANES
    tile_rows = min(block_rows, rows)
    num_tiles = -(-rows // tile_rows)
    rows = num_tiles * tile_rows
    padded = rows * LANES

    pos_flat = jnp.ravel(pos_preds)
    neg_flat = jnp.ravel(neg_preds)
    pad = padded - n
    if pad:
        # Pad so d = +huge for padded slots -> stable softplus(-d) == 0 exactly.
        big = jnp.finfo(pos_flat.dtype).max
        pos_flat = jnp.concatenate(
            [pos_flat, jnp.full((pad,), big, dtype=pos_flat.dtype)])
        neg_flat = jnp.concatenate(
            [neg_flat, jnp.zeros((pad,), dtype=neg_flat.dtype)])

    pos2d = pos_flat.reshape(rows, LANES)
    neg2d = neg_flat.reshape(rows, LANES)

    partials = pl.pallas_call(
        bpr_loss_kernel,
        out_shape=jax.ShapeDtypeStruct((num_tiles, SUBLANES, LANES),
                                       jnp.float32),
        grid_spec=pltpu.PrefetchScalarGridSpec(
            num_scalar_prefetch=0,
            grid=(num_tiles,),
            in_specs=[
                pl.BlockSpec((tile_rows, LANES), lambda i: (i, 0)),
                pl.BlockSpec((tile_rows, LANES), lambda i: (i, 0)),
            ],
            out_specs=pl.BlockSpec((1, SUBLANES, LANES),
                                   lambda i: (i, 0, 0)),
        ),
        compiler_params=pltpu.CompilerParams(
            # Independent tiles -> both TensorCores can be used on v7x;
            # harmless on single-TC v5e/v6e.
            dimension_semantics=("parallel",),
            vmem_limit_bytes=32 * 1024 * 1024,
        ),
    )(pos2d, neg2d)

    # Tiny final reduction over the per-tile (8, 128) partials.
    return jnp.sum(partials)


def bpr_loss_ref(pos_preds, neg_preds):
    d = pos_preds.astype(jnp.float32) - neg_preds.astype(jnp.float32)
    return jnp.sum(jax.nn.softplus(-d))


if __name__ == "__main__":
    key = jax.random.PRNGKey(0)
    k1, k2, k3, k4 = jax.random.split(key, 4)

    # Small prediction-score shapes: (32 "items", 128 lanes), f32.
    pos_preds = jax.random.normal(k1, (32, 128), dtype=jnp.float32)
    neg_preds = jax.random.normal(k2, (32, 128), dtype=jnp.float32)

    loss = bpr_loss(pos_preds, neg_preds)
    jax.block_until_ready(loss)
    ref = bpr_loss_ref(pos_preds, neg_preds)
    assert jnp.allclose(loss, ref, rtol=1e-5, atol=1e-5), (loss, ref)

    # Odd shape + bf16: exercises padding and the in-kernel cast path.
    pos_b = jax.random.normal(k3, (7, 33), dtype=jnp.bfloat16)
    neg_b = jax.random.normal(k4, (7, 33), dtype=jnp.bfloat16)
    loss_b = bpr_loss(pos_b, neg_b)
    jax.block_until_ready(loss_b)
    ref_b = bpr_loss_ref(pos_b, neg_b)
    assert jnp.allclose(loss_b, ref_b, rtol=1e-3, atol=1e-3), (loss_b, ref_b)

    print("KERNEL_OK")
</pallas_src>

<mosaic_0001>
module attributes {stable_mosaic.version = 11 : i64} {
  func.func @bpr_loss_kernel(%arg0: i32, %arg1: memref<32x128xf32, #tpu.memory_space<vmem>>, %arg2: memref<32x128xf32, #tpu.memory_space<vmem>>, %arg3: memref<1x8x128xf32, #tpu.memory_space<vmem>>) attributes {dimension_semantics = [#tpu.dimension_semantics<parallel>], iteration_bounds = array<i64: 1>, scalar_prefetch = 0 : i64, scratch_operands = 0 : i64, tpu.core_type = #tpu.core_type<tc>, window_params = [{transform_indices = @transform_0, window_bounds = array<i64: 32, 128>}, {transform_indices = @transform_1, window_bounds = array<i64: 32, 128>}, {transform_indices = @transform_2, window_bounds = array<i64: 1, 8, 128>}]} {
    %c0 = arith.constant 0 : index
    %c0_0 = arith.constant 0 : index
    %0 = vector.load %arg1[%c0, %c0_0] : memref<32x128xf32, #tpu.memory_space<vmem>>, vector<32x128xf32>
    %c0_1 = arith.constant 0 : index
    %c0_2 = arith.constant 0 : index
    %1 = vector.load %arg2[%c0_1, %c0_2] : memref<32x128xf32, #tpu.memory_space<vmem>>, vector<32x128xf32>
    %2 = arith.subf %0, %1 : vector<32x128xf32>
    %cst = arith.constant 0.000000e+00 : f32
    %3 = vector.broadcast %cst : f32 to vector<32x128xf32>
    %4 = arith.subf %3, %2 : vector<32x128xf32>
    %cst_3 = arith.constant 0.000000e+00 : f32
    %5 = vector.broadcast %cst_3 : f32 to vector<32x128xf32>
    %6 = arith.maximumf %4, %5 : vector<32x128xf32>
    %7 = math.absf %2 : vector<32x128xf32>
    %cst_4 = arith.constant 0.000000e+00 : f32
    %8 = vector.broadcast %cst_4 : f32 to vector<32x128xf32>
    %9 = arith.subf %8, %7 : vector<32x128xf32>
    %10 = math.exp %9 : vector<32x128xf32>
    %11 = math.log1p %10 : vector<32x128xf32>
    %12 = arith.addf %6, %11 : vector<32x128xf32>
    %13 = vector.shape_cast %12 : vector<32x128xf32> to vector<4x8x128xf32>
    %cst_5 = arith.constant dense<0.000000e+00> : vector<8x128xf32>
    %14 = vector.multi_reduction <add>, %13, %cst_5 [0] : vector<4x8x128xf32> to vector<8x128xf32>
    %c0_6 = arith.constant 0 : index
    %c0_7 = arith.constant 0 : index
    %c0_8 = arith.constant 0 : index
    %15 = vector.load %arg3[%c0_6, %c0_7, %c0_8] : memref<1x8x128xf32, #tpu.memory_space<vmem>>, vector<1x8x128xf32>
    %16 = vector.shape_cast %15 : vector<1x8x128xf32> to vector<8x128xf32>
    %17 = vector.shape_cast %14 : vector<8x128xf32> to vector<1x8x128xf32>
    tpu.vector_store %arg3[%c0_6, %c0_7, %c0_8], %17 {strides = array<i32>} : memref<1x8x128xf32, #tpu.memory_space<vmem>>, vector<1x8x128xf32>,
    return
  }
  func.func @transform_0(%arg0: i32) -> (i32, i32) {
    %c0_i32 = arith.constant 0 : i32
    %c0_i32_0 = arith.constant 0 : i32
    return %arg0, %c0_i32 : i32, i32
  }
  func.func @transform_1(%arg0: i32) -> (i32, i32) {
    %c0_i32 = arith.constant 0 : i32
    %c0_i32_0 = arith.constant 0 : i32
    return %arg0, %c0_i32 : i32, i32
  }
  func.func @transform_2(%arg0: i32) -> (i32, i32, i32) {
    %c0_i32 = arith.constant 0 : i32
    %c0_i32_0 = arith.constant 0 : i32
    %c0_i32_1 = arith.constant 0 : i32
    return %arg0, %c0_i32, %c0_i32_0 : i32, i32, i32
  }
}

</mosaic_0001>

<bundles_post_ra>
// kernel: tpu_custom_call.1
= control target key start
LH: loop header
LB: loop body
LE: loop exit
PB: predicated region body
PF: predicated region fallthrough
CT: control target
= control target key end

     0   :  { %7 = vsyncpa [#allocation3], 0  ;;  %s286_s0 = inlined_call_operand.hbm [shape: f32[32,128], index: 0, kind: input, shape index: {}]   ;;  %s287_s1 = inlined_call_operand.hbm [shape: f32[32,128], index: 1, kind: input, shape index: {}]   ;;  %s288_s2 = inlined_call_operand.hbm [shape: f32[1,8,128], index: 2, kind: output, shape index: {}]  }
   0x1   :  { %8 = vsyncpa [#allocation6], 0 }
   0x2   :  { %9 = vsyncpa [#allocation4], 0  ;;  %s14_s11 = sshll.u32 %s286_s0, 4  ;;  %s241_s12 = smov [#allocation2]   ;;  %s15_s11 = int_to_ptr.hbm [resolvable:$true] %s14_s11 }
   0x3   :  { %s16_s13 = sshll.u32 %s241_s12, 4  ;;  %s27_s16 = sshll.u32 %s287_s1, 4  ;;  %s17_s13 = int_to_ptr.vmem [resolvable:$true] %s16_s13  ;;  %s28_s16 = int_to_ptr.hbm [resolvable:$true] %s27_s16 }
   0x4   :  { %s242_s17 = smov 128   ;;  %s243_s18 = smov 8  }
   0x5   :  { %22 = dma.hbm_to_vmem [thread:$0]  %s15_s11, 512, %s17_s13, [#allocation3], %s242_s17, %s242_s17, %s243_s18  }
   0x6   :  { %s244_s19 = smov [#allocation5]  }
   0x7   :  { %s29_s20 = sshll.u32 %s244_s19, 4  ;;  %s30_s20 = int_to_ptr.vmem [resolvable:$true] %s29_s20 }
   0x8   :  { %35 = dma.hbm_to_vmem [thread:$0]  %s28_s16, 512, %s30_s20, [#allocation6], %s242_s17, %s242_s17, %s243_s18  }
   0x9   :  { %235 = dma.done.wait [#allocation3], 512  }
   0xa   :  { %236 = vsyncadd [#allocation3], 4294966784 }
   0xb   :  { %237 = dma.done.wait [#allocation6], 512  }
   0xc   :  { %238 = vsyncadd [#allocation6], 4294966784  ;;  %v44_v0 = vld [vmem:[#allocation2] sm:$0xff]  ;;  %v45_v1 = vld [vmem:[#allocation2 + $0x8] sm:$0xff]  ;;  %s245_s0 = smov [#allocation7]   ;;  %s131_s23 = sshll.u32 %s288_s2, 4  ;;  %s132_s23 = int_to_ptr.hbm [resolvable:$true] %s131_s23 }
   0xd   :  { %v46_v2 = vld [vmem:[#allocation2 + $0x10] sm:$0xff]  ;;  %v47_v3 = vld [vmem:[#allocation2 + $0x18] sm:$0xff]  ;;  %v48_v4 = vld [vmem:[#allocation5] sm:$0xff]  ;;  %s129_s1 = sshll.u32 %s245_s0, 4  ;;  %s130_s1 = int_to_ptr.vmem [resolvable:$true] %s129_s1 }
   0xe   :  { %v49_v5 = vld [vmem:[#allocation5 + $0x8] sm:$0xff]  ;;  %v50_v6 = vld [vmem:[#allocation5 + $0x10] sm:$0xff]  ;;  %v51_v7 = vld [vmem:[#allocation5 + $0x18] sm:$0xff]  ;;  %v52_v8 = vsub.f32 %v44_v0, %v48_v4 }
   0xf   :  { %v53_v9 = vsub.f32 %v45_v1, %v49_v5  ;;  %v54_v10 = vsub.f32 %v46_v2, %v50_v6  ;;  %v267_v11 = vsub.f32 %v47_v3, %v51_v7 }
  0x10   :  { %v64_v12 = vand.u32 2147483647, %v52_v8  ;;  %v56_v33 = vsub.f32 0.0, %v52_v8 }
  0x11   :  { %v65_v13 = vand.u32 2147483647, %v53_v9  ;;  %v66_v14 = vand.u32 2147483647, %v54_v10  ;;  %v67_v15 = vand.u32 2147483647, %v267_v11 }
  0x12   :  { %v68_v16 = vsub.f32 0.0, %v64_v12  ;;  %v57_v39 = vsub.f32 0.0, %v53_v9  ;;  %v58_v43 = vsub.f32 0.0, %v54_v10  ;;  %v59_v45 = vsub.f32 0.0, %v267_v11 }
  0x13   :  { %v69_v17 = vsub.f32 0.0, %v65_v13  ;;  %v70_v18 = vsub.f32 0.0, %v66_v14  ;;  %v71_v19 = vsub.f32 0.0, %v67_v15  ;;  %v60_v49 = vmax.f32 %v56_v33, 0.0 }
  0x14   :  { %v72_v20 = vmul.f32 1.442695, %v68_v16  ;;  %v61_v54 = vmax.f32 %v57_v39, 0.0  ;;  %v62_v59 = vmax.f32 %v58_v43, 0.0  ;;  %v63_v1 = vmax.f32 %v59_v45, 0.0 }
  0x15   :  { %v74_v21 = vmul.f32 1.442695, %v69_v17  ;;  %v76_v22 = vmul.f32 1.442695, %v70_v18  ;;  %v78_v23 = vmul.f32 1.442695, %v71_v19 }
  0x16   :  { %147 = vpow2.f32 %v72_v20 }
  0x17   :  { %149 = vpow2.f32 %v74_v21 }
  0x18   :  { %151 = vpow2.f32 %v76_v22 }
  0x19   :  { %153 = vpow2.f32 %v78_v23 }
  0x1c   :  { %v148_v24 = vpop.eup %147 }
  0x1d   :  { %v150_v25 = vpop.eup %149  ;;  %v80_v26 = vadd.f32 1.0, %v148_v24  ;;  %v83_v27 = vmul.f32 -0.5, %v148_v24  ;;  %v86_v36 = vand.u32 2147483647, %v148_v24 }
  0x1e   :  { %v152_v28 = vpop.eup %151  ;;  %v89_v29 = vadd.f32 1.0, %v150_v25  ;;  %v92_v30 = vmul.f32 -0.5, %v150_v25  ;;  %v95_v40 = vand.u32 2147483647, %v150_v25 }
  0x1f   :  { %v154_v31 = vpop.eup %153  ;;  %155 = vlog2.f32 %v80_v26  ;;  %v98_v32 = vadd.f32 1.0, %v152_v28  ;;  %v84_v34 = vadd.f32 1.0, %v83_v27  ;;  %v101_v35 = vmul.f32 -0.5, %v152_v28 }
  0x20   :  { %157 = vlog2.f32 %v89_v29  ;;  %v93_v37 = vadd.f32 1.0, %v92_v30  ;;  %v107_v38 = vadd.f32 1.0, %v154_v31  ;;  %v110_v42 = vmul.f32 -0.5, %v154_v31 }
  0x21   :  { %159 = vlog2.f32 %v98_v32  ;;  %v102_v41 = vadd.f32 1.0, %v101_v35  ;;  %v104_v44 = vand.u32 2147483647, %v152_v28  ;;  %v85_v46 = vmul.f32 %v148_v24, %v84_v34 }
  0x22   :  { %161 = vlog2.f32 %v107_v38  ;;  %v111_v47 = vadd.f32 1.0, %v110_v42  ;;  %vm271_vm0 = vcmp.lt.f32.partialorder %v86_v36, 0.0004427343  ;;  %v94_v51 = vmul.f32 %v150_v25, %v93_v37 }
  0x23   :  { %v113_v52 = vand.u32 2147483647, %v154_v31  ;;  %vm275_vm1 = vcmp.lt.f32.partialorder %v95_v40, 0.0004427343  ;;  %v103_v57 = vmul.f32 %v152_v28, %v102_v41  ;;  %vm105_vm2 = vcmp.lt.f32.partialorder %v104_v44, 0.0004427343 }
  0x24   :  { %v112_v63 = vmul.f32 %v154_v31, %v111_v47 }
  0x25   :  { %v156_v48 = vpop.eup %155  ;;  %vm114_vm3 = vcmp.lt.f32.partialorder %v113_v52, 0.0004427343 }
  0x26   :  { %v158_v53 = vpop.eup %157  ;;  %v82_v55 = vmul.f32 0.6931472, %v156_v48 }
  0x27   :  { %v160_v58 = vpop.eup %159  ;;  %v91_v60 = vmul.f32 0.6931472, %v158_v53 }
  0x28   :  { %v88_v61 = vsel %vm271_vm0, %v85_v46, %v82_v55  ;;  %v100_v62 = vmul.f32 0.6931472, %v160_v58  ;;  %v162_v0 = vpop.eup %161 }
  0x29   :  { %v97_v2 = vsel %vm275_vm1, %v94_v51, %v91_v60  ;;  %v116_v3 = vadd.f32 %v88_v61, %v60_v49  ;;  %v109_v5 = vmul.f32 0.6931472, %v162_v0 }
  0x2a   :  { %v106_v4 = vsel %vm105_vm2, %v103_v57, %v100_v62  ;;  %v117_v6 = vadd.f32 %v97_v2, %v61_v54 }
  0x2b   :  { %v118_v7 = vadd.f32 %v106_v4, %v62_v59  ;;  %v115_v8 = vsel %vm114_vm3, %v112_v63, %v109_v5 }
  0x2c   :  { %v120_v9 = vadd.f32 %v117_v6, %v116_v3  ;;  %v119_v10 = vadd.f32 %v115_v8, %v63_v1 }
  0x2e   :  { %v121_v11 = vadd.f32 %v120_v9, %v118_v7 }
  0x30   :  { %v122_v12 = vadd.f32 %v121_v11, %v119_v10 }
  0x32   :  { %123 = vst [vmem:[#allocation7] sm:$0xff] %v122_v12 }
  0x33   :  { %134 = dma.vmem_to_hbm [thread:$0]  %s130_s1, 128, %s132_s23, [#allocation4]  }
  0x34   :  { %239 = dma.done.wait [#allocation4], 128  }
  0x35   :  { %240 = vsyncadd [#allocation4], 4294967168 }
  0x36   :  { %139 = vsyncpa [#allocation3], 1 }
  0x37   :  { %140 = vsyncpa [#allocation6], 1 }
  0x38   :  { %141 = vsyncpa [#allocation4], 1 }

</bundles_post_ra>
